<compile_context>
chip_gen: v7x
topology: tpu7x:2x2x1
jax: 0.10.0
libtpu: 0.0.40
codegen_flags: <defaults>
</compile_context>

<pallas_src>
import functools

import jax
import jax.numpy as jnp
from jax import lax
from jax.experimental import pallas as pl
from jax.experimental.pallas import tpu as pltpu


def fused_fp_kernel(*refs, has_pts1, s_is_one, num_neighbors, num_layers,
                    transpose_out):
    """Fused: 3-NN inverse-distance interpolation + concat(points1, interp)
    + full Conv1d(k=1)+foldedBN+ReLU MLP stack, one tile of N per grid step.

    Ref order (optional refs in brackets):
      [xyz1 (1,TN,C), xyz2 (1,C,S)]            -- only when S > 1
      pts2 (1,S,D2)
      [pts1 (1,TN,D1)]                         -- only when points1 is given
      w0_i (D2,C0) [, w0_p (D1,C0)], scale0 (1,C0), shift0 (1,C0)
      per extra layer: w (Cin,Cout), scale (1,Cout), shift (1,Cout)
      o_ref (1,C_last,TN) if transpose_out else (1,TN,C_last)
    """
    pos = 0
    if not s_is_one:
        xyz1_ref = refs[pos]
        xyz2_ref = refs[pos + 1]
        pos += 2
    pts2_ref = refs[pos]
    pos += 1
    if has_pts1:
        pts1_ref = refs[pos]
        pos += 1
    w0_i_ref = refs[pos]
    pos += 1
    if has_pts1:
        w0_p_ref = refs[pos]
        pos += 1
    scale0_ref = refs[pos]
    shift0_ref = refs[pos + 1]
    pos += 2
    layer_refs = refs[pos:-1]
    o_ref = refs[-1]

    TN = o_ref.shape[2] if transpose_out else o_ref.shape[1]
    p2 = pts2_ref[0]                      # (S, D2), compute dtype
    w0_i = w0_i_ref[...]                  # (D2, C0)

    if s_is_one:
        # interpolated = repeat of the single points2 row -> broadcast its
        # first-layer contribution over the tile.
        base = jnp.dot(p2, w0_i, preferred_element_type=jnp.float32)  # (1, C0)
        y = jnp.broadcast_to(base, (TN, base.shape[1]))
    else:
        x1 = xyz1_ref[0].astype(jnp.float32)    # (TN, C)
        x2 = xyz2_ref[0].astype(jnp.float32)    # (C, S)
        C = x1.shape[1]
        S = x2.shape[1]

        # Pairwise squared distance on the VPU: sum_c (x1[:,c] - x2[c,:])^2.
        # Exact (>= 0); keeps the MXU free for the gather matmul.
        d = jnp.zeros((TN, S), jnp.float32)
        for c in range(C):
            diff = x1[:, c:c + 1] - x2[c:c + 1, :]          # (TN, S)
            d = d + diff * diff
        # Matches the reference clamp (dists < 1e-10 -> 1e-10) and keeps the
        # packed values away from denormals.
        d = jnp.maximum(d, 1e-10)

        # Pack the lane index into the low mantissa bits: one float min gives
        # both the min distance and its argmin (single XLU reduce / neighbor).
        nbits = max(1, (S - 1).bit_length())
        lane_mask = (1 << nbits) - 1
        iota = lax.broadcasted_iota(jnp.int32, (TN, S), 1)
        d_bits = pltpu.bitcast(d, jnp.int32)
        packed = pltpu.bitcast((d_bits & jnp.int32(~lane_mask)) | iota,
                               jnp.float32)

        W = jnp.zeros((TN, S), jnp.float32)
        wsum = jnp.zeros((TN, 1), jnp.float32)
        for _ in range(num_neighbors):
            pmin = jnp.min(packed, axis=-1, keepdims=True)          # (TN, 1)
            pmin_bits = pltpu.bitcast(pmin, jnp.int32)
            idx_min = pmin_bits & jnp.int32(lane_mask)               # (TN, 1)
            dmin = pltpu.bitcast(pmin_bits & jnp.int32(~lane_mask),
                                 jnp.float32)                        # (TN, 1)
            sel = iota == idx_min                                    # (TN, S)
            w = pl.reciprocal(dmin, approx=True)                     # (TN, 1)
            W = W + jnp.where(sel, w, 0.0)
            wsum = wsum + w
            packed = jnp.where(sel, jnp.float32(jnp.inf), packed)    # exclude

        # Normalize BEFORE the gather matmul so W is bounded in [0,1] and the
        # matmul can run in bf16 on the MXU (f32 accumulate).
        Wn = (W * pl.reciprocal(wsum, approx=True)).astype(p2.dtype)
        interp = jnp.dot(Wn, p2, preferred_element_type=jnp.float32)  # (TN,D2)

        # First MLP layer fused with the (virtual) concat: split weight rows.
        y = jnp.dot(interp.astype(w0_i.dtype), w0_i,
                    preferred_element_type=jnp.float32)               # (TN,C0)

    if has_pts1:
        w0_p = w0_p_ref[...]
        y = y + jnp.dot(pts1_ref[0].astype(w0_p.dtype), w0_p,
                        preferred_element_type=jnp.float32)
    y = jnp.maximum(y * scale0_ref[...] + shift0_ref[...], 0.0)
    if num_layers > 1:
        y = y.astype(w0_i.dtype)          # carry activation in compute dtype

    # Remaining Conv1d(k=1)+foldedBN+ReLU layers: activations stay resident.
    for i in range(num_layers - 1):
        w = layer_refs[3 * i][...]
        scale = layer_refs[3 * i + 1][...]
        shift = layer_refs[3 * i + 2][...]
        y = jnp.dot(y, w, preferred_element_type=jnp.float32)
        y = jnp.maximum(y * scale + shift, 0.0)
        if i < num_layers - 2:
            y = y.astype(w.dtype)

    if transpose_out:
        o_ref[0] = y.T.astype(o_ref.dtype)
    else:
        o_ref[0] = y.astype(o_ref.dtype)


def pointnet_feature_propagation(xyz1, xyz2, points1, points2, layer_params,
                                 use_bf16_matmul=True):
    """Equivalent of PointNetFeaturePropagation.forward.

    xyz1:    [B, C, N]   query coordinates
    xyz2:    [B, C, S]   sampled coordinates
    points1: [B, D1, N]  or None
    points2: [B, D2, S]
    layer_params: list of (w [Cin, Cout], scale [1, Cout], shift [1, Cout])
    Returns: [B, Cout_last, N]
    """
    B, C, N = xyz1.shape
    S = xyz2.shape[2]
    D2 = points2.shape[1]
    n_layers = len(layer_params)
    compute_dtype = jnp.bfloat16 if use_bf16_matmul else jnp.float32

    weights = [w.astype(compute_dtype) for (w, _, _) in layer_params]
    scales = [s.astype(jnp.float32) for (_, s, _) in layer_params]
    shifts = [sh.astype(jnp.float32) for (_, _, sh) in layer_params]

    s_is_one = (S == 1)
    has_pts1 = points1 is not None
    D1 = points1.shape[1] if has_pts1 else 0

    # Channels-last feature inputs, already in the matmul compute dtype so the
    # kernel DMAs half the bytes.
    pts2_t = jnp.transpose(points2, (0, 2, 1)).astype(compute_dtype)  # [B,S,D2]
    pts1_t = (jnp.transpose(points1, (0, 2, 1)).astype(compute_dtype)
              if has_pts1 else None)                                   # [B,N,D1]
    xyz1_t = xyz2_f = None
    if not s_is_one:
        xyz1_t = jnp.transpose(xyz1, (0, 2, 1)).astype(jnp.float32)   # [B,N,C]
        xyz2_f = xyz2.astype(jnp.float32)                              # [B,C,S]

    # ---- tile selection (VMEM- and dual-TensorCore-aware) -------------------
    if s_is_one:
        tn_target = 1024
    else:
        # ~6 live (TN, S) 32-bit temporaries in the top-k phase: keep that
        # working set around <= 12 MiB so it plus double-buffered inputs and
        # weights fits comfortably in the 48 MiB scoped-VMEM limit (v7x: 64).
        tn_target = (12 * 1024 * 1024) // (24 * S)
        tn_target = max(128, min(1024, (tn_target // 128) * 128))
    TN = N if N <= tn_target else tn_target
    grid_n = pl.cdiv(N, TN)              # ragged last block: OOB rows dropped
    while B * grid_n < 4 and TN % 256 == 0:   # keep both v7x TCs fed
        TN //= 2
        grid_n = pl.cdiv(N, TN)

    C0 = weights[0].shape[1]
    C_last = weights[-1].shape[1]
    # By construction TN is either N or a multiple of 128, so the in-kernel
    # transpose + lane-dense [B, Cout, N] store is (almost) always legal.
    transpose_out = (TN % 128 == 0) or (TN == N)

    in_arrays, in_specs = [], []
    if not s_is_one:
        in_arrays += [xyz1_t, xyz2_f]
        in_specs += [pl.BlockSpec((1, TN, C), lambda b, n: (b, n, 0)),
                     pl.BlockSpec((1, C, S), lambda b, n: (b, 0, 0))]
    in_arrays += [pts2_t]
    in_specs += [pl.BlockSpec((1, S, D2), lambda b, n: (b, 0, 0))]
    if has_pts1:
        in_arrays += [pts1_t]
        in_specs += [pl.BlockSpec((1, TN, D1), lambda b, n: (b, n, 0))]
        # First-layer weight rows split for the virtual concat([pts1, interp]).
        in_arrays += [weights[0][D1:, :], weights[0][:D1, :]]
        in_specs += [pl.BlockSpec((D2, C0), lambda b, n: (0, 0)),
                     pl.BlockSpec((D1, C0), lambda b, n: (0, 0))]
    else:
        in_arrays += [weights[0]]
        in_specs += [pl.BlockSpec((D2, C0), lambda b, n: (0, 0))]
    in_arrays += [scales[0], shifts[0]]
    in_specs += [pl.BlockSpec((1, C0), lambda b, n: (0, 0)),
                 pl.BlockSpec((1, C0), lambda b, n: (0, 0))]
    for l in range(1, n_layers):
        cin, cout = weights[l].shape
        in_arrays += [weights[l], scales[l], shifts[l]]
        in_specs += [pl.BlockSpec((cin, cout), lambda b, n: (0, 0)),
                     pl.BlockSpec((1, cout), lambda b, n: (0, 0)),
                     pl.BlockSpec((1, cout), lambda b, n: (0, 0))]

    if transpose_out:
        out_shape = jax.ShapeDtypeStruct((B, C_last, N), jnp.float32)
        out_spec = pl.BlockSpec((1, C_last, TN), lambda b, n: (b, 0, n))
    else:
        out_shape = jax.ShapeDtypeStruct((B, N, C_last), jnp.float32)
        out_spec = pl.BlockSpec((1, TN, C_last), lambda b, n: (b, n, 0))

    kern = functools.partial(
        fused_fp_kernel, has_pts1=has_pts1, s_is_one=s_is_one,
        num_neighbors=min(3, S), num_layers=n_layers,
        transpose_out=transpose_out)

    out = pl.pallas_call(
        kern, out_shape=out_shape, grid=(B, grid_n),
        in_specs=in_specs, out_specs=out_spec,
        compiler_params=pltpu.CompilerParams(
            dimension_semantics=("parallel", "parallel"),
            vmem_limit_bytes=48 * 1024 * 1024),
    )(*in_arrays)

    return out if transpose_out else jnp.transpose(out, (0, 2, 1))


def init_params(key, in_channel, mlp):
    """Deterministic Conv1d + BatchNorm1d parameters, BN folded (eval mode)."""
    eps = 1e-5
    params = []
    last = in_channel
    for out_channel in mlp:
        k_w, k_b, k_g, k_be, key = jax.random.split(key, 5)
        w = jax.random.normal(k_w, (out_channel, last, 1), jnp.float32) * 0.1
        bias = jax.random.normal(k_b, (out_channel,), jnp.float32) * 0.1
        gamma = 1.0 + 0.1 * jax.random.normal(k_g, (out_channel,), jnp.float32)
        beta = 0.1 * jax.random.normal(k_be, (out_channel,), jnp.float32)
        running_mean = jnp.zeros((out_channel,), jnp.float32)
        running_var = jnp.ones((out_channel,), jnp.float32)
        scale = gamma / jnp.sqrt(running_var + eps)
        shift = (bias - running_mean) * scale + beta
        params.append((
            jnp.transpose(w[:, :, 0], (1, 0)),   # [Cin, Cout]
            scale[None, :],                      # [1, Cout]
            shift[None, :],                      # [1, Cout]
        ))
        last = out_channel
    return params


if __name__ == "__main__":
    key = jax.random.PRNGKey(0)
    B, C, N, S = 2, 3, 16, 8
    D1, D2 = 4, 6
    mlp = [32, 16]
    in_channel = D1 + D2

    k1, k2, k3, k4, kp = jax.random.split(key, 5)
    xyz1 = jax.random.normal(k1, (B, C, N), jnp.float32)
    xyz2 = jax.random.normal(k2, (B, C, S), jnp.float32)
    points1 = jax.random.normal(k3, (B, D1, N), jnp.float32)
    points2 = jax.random.normal(k4, (B, D2, S), jnp.float32)

    params = init_params(kp, in_channel, mlp)

    fn = jax.jit(functools.partial(pointnet_feature_propagation,
                                   layer_params=params))
    out = fn(xyz1, xyz2, points1, points2)
    jax.block_until_ready(out)
    assert out.shape == (B, mlp[-1], N), out.shape
    print("KERNEL_OK")
</pallas_src>

<mosaic_0001>
module attributes {stable_mosaic.version = 11 : i64} {
  func.func @fused_fp_kernel(%arg0: i32, %arg1: i32, %arg2: memref<1x16x3xf32, #tpu.memory_space<vmem>>, %arg3: memref<1x3x8xf32, #tpu.memory_space<vmem>>, %arg4: memref<1x8x6xbf16, #tpu.memory_space<vmem>>, %arg5: memref<1x16x4xbf16, #tpu.memory_space<vmem>>, %arg6: memref<6x32xbf16, #tpu.memory_space<vmem>>, %arg7: memref<4x32xbf16, #tpu.memory_space<vmem>>, %arg8: memref<1x32xf32, #tpu.memory_space<vmem>>, %arg9: memref<1x32xf32, #tpu.memory_space<vmem>>, %arg10: memref<32x16xbf16, #tpu.memory_space<vmem>>, %arg11: memref<1x16xf32, #tpu.memory_space<vmem>>, %arg12: memref<1x16xf32, #tpu.memory_space<vmem>>, %arg13: memref<1x16x16xf32, #tpu.memory_space<vmem>>) attributes {dimension_semantics = [#tpu.dimension_semantics<parallel>, #tpu.dimension_semantics<parallel>], iteration_bounds = array<i64: 2, 1>, scalar_prefetch = 0 : i64, scratch_operands = 0 : i64, tpu.core_type = #tpu.core_type<tc>, window_params = [{transform_indices = @transform_0, window_bounds = array<i64: 1, 16, 3>}, {transform_indices = @transform_1, window_bounds = array<i64: 1, 3, 8>}, {transform_indices = @transform_2, window_bounds = array<i64: 1, 8, 6>}, {transform_indices = @transform_3, window_bounds = array<i64: 1, 16, 4>}, {pipeline_mode = #tpu.pipeline_mode<synchronous>, transform_indices = @transform_4, window_bounds = array<i64: 6, 32>}, {pipeline_mode = #tpu.pipeline_mode<synchronous>, transform_indices = @transform_5, window_bounds = array<i64: 4, 32>}, {pipeline_mode = #tpu.pipeline_mode<synchronous>, transform_indices = @transform_6, window_bounds = array<i64: 1, 32>}, {pipeline_mode = #tpu.pipeline_mode<synchronous>, transform_indices = @transform_7, window_bounds = array<i64: 1, 32>}, {pipeline_mode = #tpu.pipeline_mode<synchronous>, transform_indices = @transform_8, window_bounds = array<i64: 32, 16>}, {pipeline_mode = #tpu.pipeline_mode<synchronous>, transform_indices = @transform_9, window_bounds = array<i64: 1, 16>}, {pipeline_mode = #tpu.pipeline_mode<synchronous>, transform_indices = @transform_10, window_bounds = array<i64: 1, 16>}, {transform_indices = @transform_11, window_bounds = array<i64: 1, 16, 16>}]} {
    %c0 = arith.constant 0 : index
    %c0_0 = arith.constant 0 : index
    %c0_1 = arith.constant 0 : index
    %0 = vector.load %arg4[%c0, %c0_0, %c0_1] : memref<1x8x6xbf16, #tpu.memory_space<vmem>>, vector<1x8x6xbf16>
    %1 = vector.shape_cast %0 : vector<1x8x6xbf16> to vector<8x6xbf16>
    %c0_2 = arith.constant 0 : index
    %c0_3 = arith.constant 0 : index
    %2 = vector.load %arg6[%c0_2, %c0_3] : memref<6x32xbf16, #tpu.memory_space<vmem>>, vector<6x32xbf16>
    %c0_4 = arith.constant 0 : index
    %c0_5 = arith.constant 0 : index
    %c0_6 = arith.constant 0 : index
    %3 = vector.load %arg2[%c0_4, %c0_5, %c0_6] : memref<1x16x3xf32, #tpu.memory_space<vmem>>, vector<1x16x3xf32>
    %4 = vector.shape_cast %3 : vector<1x16x3xf32> to vector<16x3xf32>
    %c0_7 = arith.constant 0 : index
    %c0_8 = arith.constant 0 : index
    %c0_9 = arith.constant 0 : index
    %5 = vector.load %arg3[%c0_7, %c0_8, %c0_9] : memref<1x3x8xf32, #tpu.memory_space<vmem>>, vector<1x3x8xf32>
    %6 = vector.shape_cast %5 : vector<1x3x8xf32> to vector<3x8xf32>
    %cst = arith.constant 0.000000e+00 : f32
    %7 = vector.broadcast %cst : f32 to vector<16x8xf32>
    %8 = vector.extract_strided_slice %4 {offsets = [0, 0], sizes = [16, 1], strides = [1, 1]} : vector<16x3xf32> to vector<16x1xf32>
    %9 = vector.extract_strided_slice %6 {offsets = [0, 0], sizes = [1, 8], strides = [1, 1]} : vector<3x8xf32> to vector<1x8xf32>
    %10 = vector.broadcast %8 : vector<16x1xf32> to vector<16x8xf32>
    %11 = vector.broadcast %9 : vector<1x8xf32> to vector<16x8xf32>
    %12 = arith.subf %10, %11 : vector<16x8xf32>
    %13 = arith.mulf %12, %12 : vector<16x8xf32>
    %14 = arith.addf %7, %13 : vector<16x8xf32>
    %15 = vector.extract_strided_slice %4 {offsets = [0, 1], sizes = [16, 1], strides = [1, 1]} : vector<16x3xf32> to vector<16x1xf32>
    %16 = vector.extract_strided_slice %6 {offsets = [1, 0], sizes = [1, 8], strides = [1, 1]} : vector<3x8xf32> to vector<1x8xf32>
    %17 = vector.broadcast %15 : vector<16x1xf32> to vector<16x8xf32>
    %18 = vector.broadcast %16 : vector<1x8xf32> to vector<16x8xf32>
    %19 = arith.subf %17, %18 : vector<16x8xf32>
    %20 = arith.mulf %19, %19 : vector<16x8xf32>
    %21 = arith.addf %14, %20 : vector<16x8xf32>
    %22 = vector.extract_strided_slice %4 {offsets = [0, 2], sizes = [16, 1], strides = [1, 1]} : vector<16x3xf32> to vector<16x1xf32>
    %23 = vector.extract_strided_slice %6 {offsets = [2, 0], sizes = [1, 8], strides = [1, 1]} : vector<3x8xf32> to vector<1x8xf32>
    %24 = vector.broadcast %22 : vector<16x1xf32> to vector<16x8xf32>
    %25 = vector.broadcast %23 : vector<1x8xf32> to vector<16x8xf32>
    %26 = arith.subf %24, %25 : vector<16x8xf32>
    %27 = arith.mulf %26, %26 : vector<16x8xf32>
    %28 = arith.addf %21, %27 : vector<16x8xf32>
    %cst_10 = arith.constant 1.000000e-10 : f32
    %29 = vector.broadcast %cst_10 : f32 to vector<16x8xf32>
    %30 = arith.maximumf %28, %29 : vector<16x8xf32>
    %31 = tpu.iota {dimensions = array<i32: 1>} : vector<16x8xi32>
    %32 = tpu.bitcast %30 : vector<16x8xf32> -> vector<16x8xi32>
    %c-8_i32 = arith.constant -8 : i32
    %33 = vector.broadcast %c-8_i32 : i32 to vector<16x8xi32>
    %34 = arith.andi %32, %33 : vector<16x8xi32>
    %35 = arith.ori %34, %31 : vector<16x8xi32>
    %36 = tpu.bitcast %35 : vector<16x8xi32> -> vector<16x8xf32>
    %cst_11 = arith.constant 0.000000e+00 : f32
    %37 = vector.broadcast %cst_11 : f32 to vector<16x8xf32>
    %cst_12 = arith.constant 0.000000e+00 : f32
    %38 = vector.broadcast %cst_12 : f32 to vector<16x1xf32>
    %cst_13 = arith.constant dense<0x7F800000> : vector<16xf32>
    %39 = vector.multi_reduction <minimumf>, %36, %cst_13 [1] : vector<16x8xf32> to vector<16xf32>
    %40 = vector.shape_cast %39 : vector<16xf32> to vector<16x1xf32>
    %41 = tpu.bitcast %40 : vector<16x1xf32> -> vector<16x1xi32>
    %c7_i32 = arith.constant 7 : i32
    %42 = vector.broadcast %c7_i32 : i32 to vector<16x1xi32>
    %43 = arith.andi %41, %42 : vector<16x1xi32>
    %c-8_i32_14 = arith.constant -8 : i32
    %44 = vector.broadcast %c-8_i32_14 : i32 to vector<16x1xi32>
    %45 = arith.andi %41, %44 : vector<16x1xi32>
    %46 = tpu.bitcast %45 : vector<16x1xi32> -> vector<16x1xf32>
    %47 = vector.broadcast %43 : vector<16x1xi32> to vector<16x8xi32>
    %48 = arith.cmpi eq, %31, %47 : vector<16x8xi32>
    %49 = tpu.reciprocal %46 {approx = true} : vector<16x1xf32> -> vector<16x1xf32>
    %cst_15 = arith.constant 0.000000e+00 : f32
    %50 = vector.shape_cast %49 : vector<16x1xf32> to vector<16x1xf32>
    %51 = vector.broadcast %50 : vector<16x1xf32> to vector<16x8xf32>
    %52 = vector.broadcast %cst_15 : f32 to vector<16x8xf32>
    %53 = arith.select %48, %51, %52 : vector<16x8xi1>, vector<16x8xf32>
    %54 = arith.addf %37, %53 : vector<16x8xf32>
    %55 = arith.addf %38, %49 : vector<16x1xf32>
    %cst_16 = arith.constant 0x7F800000 : f32
    %56 = vector.broadcast %cst_16 : f32 to vector<16x8xf32>
    %57 = arith.select %48, %56, %36 : vector<16x8xi1>, vector<16x8xf32>
    %cst_17 = arith.constant dense<0x7F800000> : vector<16xf32>
    %58 = vector.multi_reduction <minimumf>, %57, %cst_17 [1] : vector<16x8xf32> to vector<16xf32>
    %59 = vector.shape_cast %58 : vector<16xf32> to vector<16x1xf32>
    %60 = tpu.bitcast %59 : vector<16x1xf32> -> vector<16x1xi32>
    %c7_i32_18 = arith.constant 7 : i32
    %61 = vector.broadcast %c7_i32_18 : i32 to vector<16x1xi32>
    %62 = arith.andi %60, %61 : vector<16x1xi32>
    %c-8_i32_19 = arith.constant -8 : i32
    %63 = vector.broadcast %c-8_i32_19 : i32 to vector<16x1xi32>
    %64 = arith.andi %60, %63 : vector<16x1xi32>
    %65 = tpu.bitcast %64 : vector<16x1xi32> -> vector<16x1xf32>
    %66 = vector.broadcast %62 : vector<16x1xi32> to vector<16x8xi32>
    %67 = arith.cmpi eq, %31, %66 : vector<16x8xi32>
    %68 = tpu.reciprocal %65 {approx = true} : vector<16x1xf32> -> vector<16x1xf32>
    %cst_20 = arith.constant 0.000000e+00 : f32
    %69 = vector.shape_cast %68 : vector<16x1xf32> to vector<16x1xf32>
    %70 = vector.broadcast %69 : vector<16x1xf32> to vector<16x8xf32>
    %71 = vector.broadcast %cst_20 : f32 to vector<16x8xf32>
    %72 = arith.select %67, %70, %71 : vector<16x8xi1>, vector<16x8xf32>
    %73 = arith.addf %54, %72 : vector<16x8xf32>
    %74 = arith.addf %55, %68 : vector<16x1xf32>
    %cst_21 = arith.constant 0x7F800000 : f32
    %75 = vector.broadcast %cst_21 : f32 to vector<16x8xf32>
    %76 = arith.select %67, %75, %57 : vector<16x8xi1>, vector<16x8xf32>
    %cst_22 = arith.constant dense<0x7F800000> : vector<16xf32>
    %77 = vector.multi_reduction <minimumf>, %76, %cst_22 [1] : vector<16x8xf32> to vector<16xf32>
    %78 = vector.shape_cast %77 : vector<16xf32> to vector<16x1xf32>
    %79 = tpu.bitcast %78 : vector<16x1xf32> -> vector<16x1xi32>
    %c7_i32_23 = arith.constant 7 : i32
    %80 = vector.broadcast %c7_i32_23 : i32 to vector<16x1xi32>
    %81 = arith.andi %79, %80 : vector<16x1xi32>
    %c-8_i32_24 = arith.constant -8 : i32
    %82 = vector.broadcast %c-8_i32_24 : i32 to vector<16x1xi32>
    %83 = arith.andi %79, %82 : vector<16x1xi32>
    %84 = tpu.bitcast %83 : vector<16x1xi32> -> vector<16x1xf32>
    %85 = vector.broadcast %81 : vector<16x1xi32> to vector<16x8xi32>
    %86 = arith.cmpi eq, %31, %85 : vector<16x8xi32>
    %87 = tpu.reciprocal %84 {approx = true} : vector<16x1xf32> -> vector<16x1xf32>
    %cst_25 = arith.constant 0.000000e+00 : f32
    %88 = vector.shape_cast %87 : vector<16x1xf32> to vector<16x1xf32>
    %89 = vector.broadcast %88 : vector<16x1xf32> to vector<16x8xf32>
    %90 = vector.broadcast %cst_25 : f32 to vector<16x8xf32>
    %91 = arith.select %86, %89, %90 : vector<16x8xi1>, vector<16x8xf32>
    %92 = arith.addf %73, %91 : vector<16x8xf32>
    %93 = arith.addf %74, %87 : vector<16x1xf32>
    %94 = tpu.reciprocal %93 {approx = true} : vector<16x1xf32> -> vector<16x1xf32>
    %95 = vector.broadcast %94 : vector<16x1xf32> to vector<16x8xf32>
    %96 = arith.mulf %92, %95 : vector<16x8xf32>
    %97 = arith.truncf %96 : vector<16x8xf32> to vector<16x8xbf16>
    %cst_26 = arith.constant dense<0.000000e+00> : vector<16x6xf32>
    %98 = tpu.matmul %97, %1, %cst_26 {dimension_numbers = #tpu.dot_dimension_numbers<[1], [0], [0], [1], [0, 0, 1, 1], [], []>} : vector<16x8xbf16>, vector<8x6xbf16>, vector<16x6xf32> -> vector<16x6xf32>
    %99 = arith.truncf %98 : vector<16x6xf32> to vector<16x6xbf16>
    %cst_27 = arith.constant dense<0.000000e+00> : vector<16x32xf32>
    %100 = tpu.matmul %99, %2, %cst_27 {dimension_numbers = #tpu.dot_dimension_numbers<[1], [0], [0], [1], [0, 0, 1, 1], [], []>} : vector<16x6xbf16>, vector<6x32xbf16>, vector<16x32xf32> -> vector<16x32xf32>
    %c0_28 = arith.constant 0 : index
    %c0_29 = arith.constant 0 : index
    %101 = vector.load %arg7[%c0_28, %c0_29] : memref<4x32xbf16, #tpu.memory_space<vmem>>, vector<4x32xbf16>
    %c0_30 = arith.constant 0 : index
    %c0_31 = arith.constant 0 : index
    %c0_32 = arith.constant 0 : index
    %102 = vector.load %arg5[%c0_30, %c0_31, %c0_32] : memref<1x16x4xbf16, #tpu.memory_space<vmem>>, vector<1x16x4xbf16>
    %103 = vector.shape_cast %102 : vector<1x16x4xbf16> to vector<16x4xbf16>
    %cst_33 = arith.constant dense<0.000000e+00> : vector<16x32xf32>
    %104 = tpu.matmul %103, %101, %cst_33 {dimension_numbers = #tpu.dot_dimension_numbers<[1], [0], [0], [1], [0, 0, 1, 1], [], []>} : vector<16x4xbf16>, vector<4x32xbf16>, vector<16x32xf32> -> vector<16x32xf32>
    %105 = arith.addf %100, %104 : vector<16x32xf32>
    %c0_34 = arith.constant 0 : index
    %c0_35 = arith.constant 0 : index
    %106 = vector.load %arg8[%c0_34, %c0_35] : memref<1x32xf32, #tpu.memory_space<vmem>>, vector<1x32xf32>
    %107 = vector.broadcast %106 : vector<1x32xf32> to vector<16x32xf32>
    %108 = arith.mulf %105, %107 : vector<16x32xf32>
    %c0_36 = arith.constant 0 : index
    %c0_37 = arith.constant 0 : index
    %109 = vector.load %arg9[%c0_36, %c0_37] : memref<1x32xf32, #tpu.memory_space<vmem>>, vector<1x32xf32>
    %110 = vector.broadcast %109 : vector<1x32xf32> to vector<16x32xf32>
    %111 = arith.addf %108, %110 : vector<16x32xf32>
    %cst_38 = arith.constant 0.000000e+00 : f32
    %112 = vector.broadcast %cst_38 : f32 to vector<16x32xf32>
    %113 = arith.maximumf %111, %112 : vector<16x32xf32>
    %114 = arith.truncf %113 : vector<16x32xf32> to vector<16x32xbf16>
    %c0_39 = arith.constant 0 : index
    %c0_40 = arith.constant 0 : index
    %115 = vector.load %arg10[%c0_39, %c0_40] : memref<32x16xbf16, #tpu.memory_space<vmem>>, vector<32x16xbf16>
    %c0_41 = arith.constant 0 : index
    %c0_42 = arith.constant 0 : index
    %116 = vector.load %arg11[%c0_41, %c0_42] : memref<1x16xf32, #tpu.memory_space<vmem>>, vector<1x16xf32>
    %c0_43 = arith.constant 0 : index
    %c0_44 = arith.constant 0 : index
    %117 = vector.load %arg12[%c0_43, %c0_44] : memref<1x16xf32, #tpu.memory_space<vmem>>, vector<1x16xf32>
    %cst_45 = arith.constant dense<0.000000e+00> : vector<16x16xf32>
    %118 = tpu.matmul %114, %115, %cst_45 {dimension_numbers = #tpu.dot_dimension_numbers<[1], [0], [0], [1], [0, 0, 1, 1], [], []>} : vector<16x32xbf16>, vector<32x16xbf16>, vector<16x16xf32> -> vector<16x16xf32>
    %119 = vector.broadcast %116 : vector<1x16xf32> to vector<16x16xf32>
    %120 = arith.mulf %118, %119 : vector<16x16xf32>
    %121 = vector.broadcast %117 : vector<1x16xf32> to vector<16x16xf32>
    %122 = arith.addf %120, %121 : vector<16x16xf32>
    %cst_46 = arith.constant 0.000000e+00 : f32
    %123 = vector.broadcast %cst_46 : f32 to vector<16x16xf32>
    %124 = arith.maximumf %122, %123 : vector<16x16xf32>
    %125 = tpu.transpose %124, [1, 0] : vector<16x16xf32> -> vector<16x16xf32>
    %c0_47 = arith.constant 0 : index
    %c0_48 = arith.constant 0 : index
    %c0_49 = arith.constant 0 : index
    %126 = vector.load %arg13[%c0_47, %c0_48, %c0_49] : memref<1x16x16xf32, #tpu.memory_space<vmem>>, vector<1x16x16xf32>
    %127 = vector.shape_cast %126 : vector<1x16x16xf32> to vector<16x16xf32>
    %128 = vector.shape_cast %125 : vector<16x16xf32> to vector<1x16x16xf32>
    tpu.vector_store %arg13[%c0_47, %c0_48, %c0_49], %128 {strides = array<i32>} : memref<1x16x16xf32, #tpu.memory_space<vmem>>, vector<1x16x16xf32>,
    return
  }
  func.func @transform_0(%arg0: i32, %arg1: i32) -> (i32, i32, i32) {
    %c0_i32 = arith.constant 0 : i32
    %c0_i32_0 = arith.constant 0 : i32
    return %arg0, %arg1, %c0_i32 : i32, i32, i32
  }
  func.func @transform_1(%arg0: i32, %arg1: i32) -> (i32, i32, i32) {
    %c0_i32 = arith.constant 0 : i32
    %c0_i32_0 = arith.constant 0 : i32
    %c0_i32_1 = arith.constant 0 : i32
    return %arg0, %c0_i32, %c0_i32_0 : i32, i32, i32
  }
  func.func @transform_2(%arg0: i32, %arg1: i32) -> (i32, i32, i32) {
    %c0_i32 = arith.constant 0 : i32
    %c0_i32_0 = arith.constant 0 : i32
    %c0_i32_1 = arith.constant 0 : i32
    return %arg0, %c0_i32, %c0_i32_0 : i32, i32, i32
  }
  func.func @transform_3(%arg0: i32, %arg1: i32) -> (i32, i32, i32) {
    %c0_i32 = arith.constant 0 : i32
    %c0_i32_0 = arith.constant 0 : i32
    return %arg0, %arg1, %c0_i32 : i32, i32, i32
  }
  func.func @transform_4(%arg0: i32, %arg1: i32) -> (i32, i32) {
    %c0_i32 = arith.constant 0 : i32
    %c0_i32_0 = arith.constant 0 : i32
    %c0_i32_1 = arith.constant 0 : i32
    return %c0_i32, %c0_i32_0 : i32, i32
  }
  func.func @transform_5(%arg0: i32, %arg1: i32) -> (i32, i32) {
    %c0_i32 = arith.constant 0 : i32
    %c0_i32_0 = arith.constant 0 : i32
    %c0_i32_1 = arith.constant 0 : i32
    return %c0_i32, %c0_i32_0 : i32, i32
  }
  func.func @transform_6(%arg0: i32, %arg1: i32) -> (i32, i32) {
    %c0_i32 = arith.constant 0 : i32
    %c0_i32_0 = arith.constant 0 : i32
    %c0_i32_1 = arith.constant 0 : i32
    return %c0_i32, %c0_i32_0 : i32, i32
  }
  func.func @transform_7(%arg0: i32, %arg1: i32) -> (i32, i32) {
    %c0_i32 = arith.constant 0 : i32
    %c0_i32_0 = arith.constant 0 : i32
    %c0_i32_1 = arith.constant 0 : i32
    return %c0_i32, %c0_i32_0 : i32, i32
  }
  func.func @transform_8(%arg0: i32, %arg1: i32) -> (i32, i32) {
    %c0_i32 = arith.constant 0 : i32
    %c0_i32_0 = arith.constant 0 : i32
    %c0_i32_1 = arith.constant 0 : i32
    return %c0_i32, %c0_i32_0 : i32, i32
  }
  func.func @transform_9(%arg0: i32, %arg1: i32) -> (i32, i32) {
    %c0_i32 = arith.constant 0 : i32
    %c0_i32_0 = arith.constant 0 : i32
    %c0_i32_1 = arith.constant 0 : i32
    return %c0_i32, %c0_i32_0 : i32, i32
  }
  func.func @transform_10(%arg0: i32, %arg1: i32) -> (i32, i32) {
    %c0_i32 = arith.constant 0 : i32
    %c0_i32_0 = arith.constant 0 : i32
    %c0_i32_1 = arith.constant 0 : i32
    return %c0_i32, %c0_i32_0 : i32, i32
  }
  func.func @transform_11(%arg0: i32, %arg1: i32) -> (i32, i32, i32) {
    %c0_i32 = arith.constant 0 : i32
    %c0_i32_0 = arith.constant 0 : i32
    return %arg0, %c0_i32, %arg1 : i32, i32, i32
  }
}

</mosaic_0001>

<bundles_post_ra>
// kernel: pointnet_feature_propagation.1
= control target key start
LH: loop header
LB: loop body
LE: loop exit
PB: predicated region body
PF: predicated region fallthrough
CT: control target
= control target key end

     0   :  { %s1581_s0 = inlined_call_operand.vmem [shape: f32[2,16,3], index: 0, kind: input, shape index: {}]   ;;  %s1582_s1 = inlined_call_operand.vmem [shape: f32[2,3,8], index: 1, kind: input, shape index: {}]   ;;  %s1583_s2 = inlined_call_operand.vmem [shape: bf16[2,8,6], index: 2, kind: input, shape index: {}]   ;;  %s1584_s3 = inlined_call_operand.vmem [shape: bf16[2,16,4], index: 3, kind: input, shape index: {}]   ;;  %s1585_s4 = inlined_call_operand.vmem [shape: bf16[6,32], index: 4, kind: input, shape index: {}]   ;;  %s1586_s5 = inlined_call_operand.vmem [shape: bf16[4,32], index: 5, kind: input, shape index: {}]   ;;  %s1587_s6 = inlined_call_operand.vmem [shape: f32[1,32], index: 6, kind: input, shape index: {}]   ;;  %s1588_s7 = inlined_call_operand.vmem [shape: f32[1,32], index: 7, kind: input, shape index: {}]   ;;  %s1589_s8 = inlined_call_operand.vmem [shape: bf16[32,16], index: 8, kind: input, shape index: {}]   ;;  %s1590_s9 = inlined_call_operand.vmem [shape: f32[1,16], index: 9, kind: input, shape index: {}]   ;;  %s1591_s10 = inlined_call_operand.vmem [shape: f32[1,16], index: 10, kind: input, shape index: {}]   ;;  %s1592_s11 = inlined_call_operand.hbm [shape: f32[2,16,16], index: 11, kind: output, shape index: {}]  }
   0x1   :  { %1593 = sst [smem:[#allocation5_spill]] %s1581_s0 }
   0x2   :  { %1594 = sst [smem:[#allocation6_spill]] %s1582_s1 }
   0x3   :  { %16 = vsyncpa [#allocation3], 0 }
   0x4   :  { %18 = vsyncpa [#allocation3 + $0x1], 0  ;;  %s1371_s17 = smov 0   ;;  %s1373_s18 = smov 0  }
   0x5   :  { %s1375_s19 = smov 0   ;;  %s1377_s20 = smov 0  }
   0x6   :  { %s1379_s21 = smov 0   ;;  %s1381_s22 = smov 0  }
   0x7 LB: > { %s1068_s23 = sadd.s32 4294967295, %s1301_s22   ;;  %s1069_s24 = sadd.s32 4294967294, %s1301_s22   ;;  %s1301_s22 = sphi %s1381_s22, %s24_s22   ;;  %s1297_s21 = sphi %s1379_s21, %s1611_s21   ;;  %s1293_s20 = sphi %s1377_s20, %s1610_s20   ;;  %s1289_s19 = sphi %s1375_s19, %s1609_s19   ;;  %s1285_s18 = sphi %s1373_s18, %s1608_s18   ;;  %s1281_s17 = sphi %s1371_s17, %s1607_s17  }
   0x8   : > { %s36_s25 = sadd.s32 1, %s1297_s21  ;;  %s300_s26 = sadd.s32 1, %s1289_s19 }
   0x9   : > { %p38_p0 = scmp.ge.s32.totalorder %s36_s25, 2  ;;  %p310_p1 = scmp.ne.s32.totalorder %s1289_s19, %s1285_s18 }
   0xa   : > { %p311_p2 = scmp.eq.s32.totalorder %s1068_s23, 1  ;;  %p316_p3 = scmp.ne.s32.totalorder %s1285_s18, %s1281_s17 }
   0xb   : > { %s1613_s25 = smov (%p38_p0, %s36_s25), 0  ;;  %p317_p5 = scmp.eq.s32.totalorder %s1069_s24, 1 }
   0xc   : > { %p1411_p4 = por %p311_p2, %p310_p1  ;;  %s295_s28 = ssub.s32 %s1297_s21, %s1613_s25 }
   0xd   : > { %p1072_p6 = scmp.ge.s32.totalorder %s1301_s22, 1  ;;  %p298_p7 = scmp.eq.s32.totalorder %s295_s28, 0 }
   0xe   : > { %p1418_p8 = por %p317_p5, %p316_p3  ;;  %p396_p9 = scmp.lt.s32.totalorder %s1301_s22, 3 }
   0xf   : > { %s1424_s30 = scalar_select %p298_p7, %s1289_s19, %s300_s26  }
  0x10   : > { %p397_p10 = pnand %p1072_p6, %p396_p9 }
  0x11   : > { %p458_p11 = scmp.lt.s32.totalorder (!%p397_p10), %s1293_s20, 1  ;;  %v1303_v0 = vmov (!%p397_p10), 1   ;;  %v1304_v1 = vmov (!%p397_p10), 0   ;;  %s1597_s0 = sld [smem:[#allocation5_spill]] (!%p397_p10)  ;;  %v1305_v4 = vmov (!%p397_p10), 2   ;;  %v501_v5 = vlaneseq (!%p397_p10)  ;;  %v1206_v50 = vld [vmem:[%s1589_s8 + $0x8] sm:$0xff] (!%p397_p10)  }
  0x12   : > { %400 = sbr.rel (%p397_p10) target bundleno = 1451 (0x5ab), region = 64  ;;  %1201 = vset.pattern.permute.xlu1 (!%p397_p10), %v1303_v0  ;;  %1200 = vset.pattern.permute.xlu0 (!%p397_p10), %v1304_v1  ;;  %s1598_s1 = sld [smem:[#allocation6_spill]] (!%p397_p10)  ;;  %vm559_vm0 = vcmask (!%p397_p10), 64512   ;;  %vm644_vm5 = vcmask (!%p397_p10), 1043456   ;;  %vm1307_vm6 = vmmov (!%p397_p10), 0   ;;  %vm702_vm7 = vcmask (!%p397_p10), 1041408  }
  0x13   : > { %v502_v6 = vshrl.u32 (!%p397_p10), %v501_v5, 7  ;;  %v1440_v36 = vand.u32 (!%p397_p10), 127, %v501_v5  ;;  %vm751_vm8 = vcmask (!%p397_p10), 1042432   ;;  %vm698_vm9 = vcmask (!%p397_p10), 31744   ;;  %v1089_v0 = vld [vmem:[%s1590_s9] ss:$0 sm:$0xff] (!%p397_p10) }
  0x14   : > { %vm747_vm12 = vcmask (!%p397_p10), 48128   ;;  %vm835_vm13 = vcmask (!%p397_p10), 261120   ;;  %vm930_vm14 = vcmask (!%p397_p10), 130048   ;;  %s1098_s14 = sshll.u32 (!%p397_p10), %s1293_s20, 8 }
  0x15   : > { %v521_v7 = vsub.s32 (!%p397_p10), 1, %v502_v6  ;;  %v503_v8 = vsub.s32 (!%p397_p10), 0, %v502_v6  ;;  %v539_v14 = vsub.s32 (!%p397_p10), 2, %v502_v6 }
  0x19   : > { %s1428_s12 = scalar_select %p458_p11, %s1293_s20, 1 }
  0x1a   : > { %s1308_s20 = smov [#allocation2]  }
  0x1b   : > { %s1096_s13 = sshll.u32 %s1428_s12, 4  ;;  %s1076_s23 = sshll.u32 %s1428_s12, 2 }
  0x1c   : > { %s465_s16 = scalar_lea.vmem %s1597_s0, %s1096_s13  ;;  %s470_s28 = scalar_lea.vmem %s1598_s1, %s1076_s23 }
  0x1d   : > { %v488_v2 = vld [vmem:[%s465_s16] sm:$0xff]  ;;  %v489_v3 = vld [vmem:[%s465_s16 + $0x8] sm:$0xff]  ;;  %s474_s15 = scalar_lea.vmem %s1583_s2, %s1076_s23  ;;  %s1097_s26 = sshll.u32 %s1428_s12, 3 }
  0x1e   : > { %512 = vperm.xlu1 %1201, %v488_v2   ;;  %493 = vperm.xlu0 %1200, %v488_v2   ;;  %v490_v9 = vld [vmem:[%s470_s28] sm:$0x7]  ;;  %s483_s13 = scalar_lea.vmem %s1584_s3, %s1097_s26  ;;  %s454_s26 = sand.u32 1, %s1285_s18  }
  0x1f   : > { %v522_v10 = vrot.slane %v490_v9, %v521_v7  ;;  %v504_v12 = vrot.slane %v490_v9, %v503_v8  ;;  %v540_v21 = vrot.slane %v490_v9, %v539_v14  ;;  %s1073_s23 = sshll.u32 %s454_s26, 4  ;;  %s1533_s16 = scalar_lea.hbm %s1592_s11, %s1098_s14 }
  0x20   : > { %s456_s28 = scalar_lea.vmem [#allocation2], %s1073_s23  ;;  %s1535_s24 = scalar_lea.sflag [#allocation3], %s454_s26 }
  0x21   : > { %s1227_s23 = sshll.u32 %s1308_s20, 4  ;;  %s1228_s23 = int_to_ptr.vmem [resolvable:$false] %s1227_s23 }
  0x22   : > { %516 = vperm.xlu1 %1201, %v489_v3   ;;  %498 = vperm.xlu0 %1200, %v489_v3   ;;  %s1229_s1 = scalar_lea.vmem %s1228_s23, 512 }
  0x26   : > { %1203 = vset.pattern.permute.xlu1 %v1305_v4  ;;  %1202 = vset.pattern.permute.xlu0 %v1305_v4 }
  0x27   : > { %534 = vperm.xlu1 %1203, %v489_v3   ;;  %530 = vperm.xlu0 %1202, %v488_v2  }
  0x9d   : > { %v513_v11 = vpop.permute.xlu1 %512  ;;  %v494_v13 = vpop.permute.xlu0 %493 }
  0x9e   : > { %v523_v15 = vsub.f32 %v513_v11, %v522_v10  ;;  %v505_v16 = vsub.f32 %v494_v13, %v504_v12 }
  0xa0   : > { %v525_v22 = vmul.f32 %v523_v15, %v523_v15  ;;  %v507_v23 = vmul.f32 %v505_v16, %v505_v16  ;;  %v486_v15 = vld [vmem:[%s474_s15] sm:$0xf]  ;;  %v1306_v16 = vmov 0.0  }
  0xa1   : > { %v517_v17 = vpop.permute.xlu1 %516  ;;  %v499_v18 = vpop.permute.xlu0 %498  ;;  %1108 = vmatprep.subr.bf16.mxu0 %v1306_v16  ;;  %1114 = vmatprep.subr.bf16.mxu1 %v1306_v16 }
  0xa2   : > { %v524_v19 = vsub.f32 %v517_v17, %v522_v10  ;;  %v506_v20 = vsub.f32 %v499_v18, %v504_v12  ;;  %v527_v30 = vadd.f32 %v525_v22, %v507_v23  ;;  %v646_v17 = vsel %vm644_vm5, %v486_v15, 0  ;;  %1110 = vmatprep.mubr.msk.bf16.mxu0 %vm1307_vm6, %v1306_v16  ;;  %1116 = vmatprep.mubr.msk.bf16.mxu1 %vm1307_vm6, %v1306_v16  ;;  %v690_v18 = vld [vmem:[%s1586_s5] sm:$0x3] }
  0xa3   : > { %1109 = vmatpush3.bf16.msra.mxu0 %v646_v17 }
  0xa4   : > { %v526_v24 = vmul.f32 %v524_v19, %v524_v19  ;;  %v508_v25 = vmul.f32 %v506_v20, %v506_v20  ;;  %1126 = vmatprep.subr.bf16.mxu0 %v1306_v16  ;;  %v704_v19 = vsel %vm702_vm7, %v690_v18, 0  ;;  %v487_v20 = vld [vmem:[%s1585_s4] sm:$0x7] }
  0xa5   : > { %1115 = vmatpush3.bf16.msra.mxu1 %v704_v19  ;;  %v753_v22 = vsel %vm751_vm8, %v487_v20, 0 }
  0xa6   : > { %v535_v26 = vpop.permute.xlu1 %534  ;;  %v531_v27 = vpop.permute.xlu0 %530  ;;  %v528_v31 = vadd.f32 %v526_v24, %v508_v25  ;;  %1120 = vmatprep.subr.bf16.mxu1 %v1306_v16 }
  0xa7   : > { %v542_v28 = vsub.f32 %v535_v26, %v540_v21  ;;  %v541_v29 = vsub.f32 %v531_v27, %v540_v21  ;;  %v1204_v21 = vld [vmem:[%s483_s13] sm:$0xff]   ;;  %s948_s13 = sshll.u32 %s456_s28, 4  ;;  %s1528_s13 = int_to_ptr.vmem [resolvable:$true] %s948_s13 }
  0xa8   : > { %1117 = vmatmul.mubr.msk.bf16.vlgmr.msra.gmra.mrb[0].mxu1 %vm698_vm9, %v1204_v21  ;;  %s1223_s0 = scalar_lea.vmem %s1528_s13, 256  ;;  %p1230_p1 = scmp.lt.s32.totalorder %s1528_s13, %s1228_s23 }
  0xa9   : > { %v544_v32 = vmul.f32 %v542_v28, %v542_v28  ;;  %v543_v33 = vmul.f32 %v541_v29, %v541_v29  ;;  %1121 = vmatpush3.bf16.msra.mxu1 %v753_v22  ;;  %1122 = vmatprep.mubr.msk.bf16.mxu1 %vm1307_vm6, %v1306_v16  ;;  %p1224_p12 = scmp.ne.s32.totalorder %s1528_s13, %s1223_s0  ;;  %p1231_p2 = scmp.lt.s32.totalorder %s1229_s1, %s1223_s0 }
  0xab   : > { %v546_v34 = vadd.f32 %v544_v32, %v528_v31  ;;  %v545_v35 = vadd.f32 %v543_v33, %v527_v30  ;;  %p1225_p13 = pnand %p1224_p12, %p1411_p4  ;;  %p1232_p3 = por %p1231_p2, %p1230_p1 }
  0xad   : > { %v548_v37 = vmax.f32 %v546_v34, 1e-10  ;;  %v547_v38 = vmax.f32 %v545_v35, 1e-10  ;;  %p1226_p0 = pneg %p1225_p13 }
  0xaf   : > { %v554_v39 = vand.u32 4294967288, %v548_v37  ;;  %v553_v40 = vand.u32 4294967288, %v547_v38  ;;  %p1233_p5 = pnand %p1232_p3, %p1226_p0 }
  0xb1   : > { %v556_v41 = vor.u32 %v554_v39, %v1440_v36  ;;  %v555_v42 = vor.u32 %v553_v40, %v1440_v36 }
  0xb3   : > { %v563_v43 = vsel %vm559_vm0, %v556_v41, inf  ;;  %v560_v44 = vsel %vm559_vm0, %v555_v42, inf }
  0xb4   : > { %564 = vmin.xlane.f32.xlu0 %v563_v43  ;;  %561 = vmin.xlane.f32.xlu1 %v560_v44 }
 0x141   : > { %v562_v45 = vpop.xlane.xlu1 %561  ;;  %v565_v46 = vpop.xlane.xlu0 %564 }
 0x142   : > { %v568_v47 = vand.u32 7, %v562_v45  ;;  %v569_v48 = vand.u32 7, %v565_v46  ;;  %v571_v55 = vand.u32 4294967288, %v565_v46  ;;  %v570_v56 = vand.u32 4294967288, %v562_v45 }
 0x144   : > { %vm1447_vm1 = vcmp.eq.s32.totalorder %v1440_v36, %v568_v47  ;;  %vm1452_vm2 = vcmp.eq.s32.totalorder %v1440_v36, %v569_v48  ;;  %1207 = vrcp.f32 %v571_v55 }
 0x145   : > { %v584_v51 = vsel %vm1447_vm1, inf, %v555_v42  ;;  %v585_v52 = vsel %vm1452_vm2, inf, %v556_v41  ;;  %1209 = vrcp.f32 %v570_v56 }
 0x146   : > { %v586_v53 = vsel %vm559_vm0, %v584_v51, inf  ;;  %v589_v54 = vsel %vm559_vm0, %v585_v52, inf }
 0x147   : > { %587 = vmin.xlane.f32.xlu0 %v586_v53  ;;  %590 = vmin.xlane.f32.xlu1 %v589_v54  ;;  %v1085_v53 = vld [vmem:[%s1588_s7] ss:$0 sm:$0xff] }
 0x14e   : > { %v1208_v5 = vpop.eup %1207 }
 0x14f   : > { %v1210_v6 = vpop.eup %1209  ;;  %v579_v9 = vsel %vm1452_vm2, %v1208_v5, 0.0 }
 0x150   : > { %v578_v11 = vsel %vm1447_vm1, %v1210_v6, 0.0 }
 0x1d4   : > { %v591_v57 = vpop.xlane.xlu1 %590  ;;  %v588_v58 = vpop.xlane.xlu0 %587 }
 0x1d5   : > { %v595_v59 = vand.u32 7, %v591_v57  ;;  %v597_v60 = vand.u32 4294967288, %v591_v57  ;;  %v594_v61 = vand.u32 7, %v588_v58  ;;  %v596_v62 = vand.u32 4294967288, %v588_v58 }
 0x1d7   : > { %1211 = vrcp.f32 %v597_v60  ;;  %vm1463_vm3 = vcmp.eq.s32.totalorder %v1440_v36, %v595_v59  ;;  %vm1468_vm4 = vcmp.eq.s32.totalorder %v1440_v36, %v594_v61 }
 0x1d8   : > { %1213 = vrcp.f32 %v596_v62  ;;  %v611_v1 = vsel %vm1463_vm3, inf, %v585_v52  ;;  %v610_v2 = vsel %vm1468_vm4, inf, %v584_v51  ;;  %v1084_v51 = vld [vmem:[%s1587_s6] ss:$0 sm:$0xff] }
 0x1d9   : > { %v615_v3 = vsel %vm559_vm0, %v611_v1, inf  ;;  %v612_v4 = vsel %vm559_vm0, %v610_v2, inf  ;;  %v1090_v1 = vld [vmem:[%s1591_s10] ss:$0 sm:$0xff] }
 0x1da   : > { %616 = vmin.xlane.f32.xlu1 %v615_v3  ;;  %613 = vmin.xlane.f32.xlu0 %v612_v4 }
 0x1e1   : > { %v1212_v7 = vpop.eup %1211 }
 0x1e2   : > { %v1214_v8 = vpop.eup %1213  ;;  %v605_v10 = vsel %vm1463_vm3, %v1212_v7, 0.0  ;;  %v609_v27 = vadd.f32 %v1212_v7, %v1208_v5 }
 0x1e3   : > { %v607_v12 = vadd.f32 %v605_v10, %v579_v9  ;;  %v604_v13 = vsel %vm1468_vm4, %v1214_v8, 0.0  ;;  %v608_v29 = vadd.f32 %v1214_v8, %v1210_v6 }
 0x1e4   : > { %v606_v14 = vadd.f32 %v604_v13, %v578_v11 }
 0x267   : > { %v617_v23 = vpop.xlane.xlu1 %616  ;;  %v614_v24 = vpop.xlane.xlu0 %613 }
 0x268   : > { %v623_v25 = vand.u32 4294967288, %v617_v23  ;;  %v622_v26 = vand.u32 4294967288, %v614_v24  ;;  %v621_v33 = vand.u32 7, %v617_v23  ;;  %v620_v34 = vand.u32 7, %v614_v24 }
 0x26a   : > { %1215 = vrcp.f32 %v623_v25  ;;  %vm627_vm10 = vcmp.eq.s32.totalorder %v1440_v36, %v621_v33  ;;  %vm626_vm11 = vcmp.eq.s32.totalorder %v1440_v36, %v620_v34  ;;  %v1205_v36 = vld [vmem:[%s1589_s8] sm:$0xff]  }
 0x26b   : > { %1217 = vrcp.f32 %v622_v26 }
 0x274   : > { %v1216_v28 = vpop.eup %1215 }
 0x275   : > { %v1218_v30 = vpop.eup %1217  ;;  %v635_v31 = vadd.f32 %v1216_v28, %v609_v27  ;;  %v631_v35 = vsel %vm627_vm10, %v1216_v28, 0.0 }
 0x276   : > { %v634_v32 = vadd.f32 %v1218_v30, %v608_v29  ;;  %v630_v37 = vsel %vm626_vm11, %v1218_v30, 0.0  ;;  %v633_v38 = vadd.f32 %v631_v35, %v607_v12 }
 0x277   : > { %1219 = vrcp.f32 %v635_v31  ;;  %v632_v40 = vadd.f32 %v630_v37, %v606_v14 }
 0x278   : > { %1221 = vrcp.f32 %v634_v32 }
 0x281   : > { %v1220_v39 = vpop.eup %1219 }
 0x282   : > { %v1222_v41 = vpop.eup %1221  ;;  %v639_v42 = vmul.f32 %v1220_v39, %v633_v38 }
 0x283   : > { %v638_v43 = vmul.f32 %v1222_v41, %v632_v40 }
 0x285   : > { %v640_v44 = vpack.c.bf16 %v639_v42, %v638_v43 }
 0x287   : > { %1111 = vmatmul.mubr.msk.bf16.vlgmr.msra.gmra.mrb[0].mxu0 %vm559_vm0, %v640_v44 }
 0x288   : > { %1130 = vmatprep.mubr.msk.bf16.mxu0 %vm1307_vm6, %v1306_v16  ;;  %1127 = vmatpush3.bf16.msra.mxu0 %v1205_v36 }
 0x289   : > { %1128 = vmatprep.subr.bf16.mxu0 %v1306_v16 }
 0x28c   : > { %1129 = vmatpush3.bf16.msra.mxu0 %v1206_v50 }
 0x35a   : > { %v682_v45 = vpop.f32.mrb[0].mxu0 }
 0x35b   : > { %v1112_v46 = vpop.f32.mrb[1].mxu0 }
 0x35c   : > { %v685_v47 = vpop.f32.mrb[2].mxu0 }
 0x35d   : > { %v689_v48 = vpack.c.bf16 %v685_v47, %v682_v45  ;;  %v1113_v49 = vpop.f32.mrb[3].mxu0 }
 0x35f   : > { %1123 = vmatmul.mubr.msk.bf16.vlgmr.msra.gmra.mrb[0].mxu1 %vm747_vm12, %v689_v48 }
 0x432   : > { %v789_v52 = vpop.f32.mrb[0].mxu1 }
 0x433   : > { %v803_v54 = vmul.f32 %v1084_v51, %v789_v52  ;;  %v1124_v55 = vpop.f32.mrb[1].mxu1 }
 0x434   : > { %v792_v56 = vpop.f32.mrb[2].mxu1 }
 0x435   : > { %v812_v57 = vadd.f32 %v1085_v53, %v803_v54  ;;  %v804_v58 = vmul.f32 %v1084_v51, %v792_v56  ;;  %v1125_v59 = vpop.f32.mrb[3].mxu1 }
 0x437   : > { %v813_v60 = vadd.f32 %v1085_v53, %v804_v58  ;;  %v814_v61 = vmax.f32 %v812_v57, 0.0 }
 0x439   : > { %v815_v62 = vmax.f32 %v813_v60, 0.0 }
 0x43b   : > { %v816_v63 = vpack.c.bf16 %v815_v62, %v814_v61 }
 0x43d   : > { %1131 = vmatmul.mubr.msk.bf16.vlgmr.msra.gmra.mrb[4].mxu0 %vm835_vm13, %v816_v63 }
 0x510   : > { %v873_v2 = vpop.f32.mrb[4].mxu0 }
 0x511   : > { %v886_v3 = vmul.f32 %v1089_v0, %v873_v2  ;;  %v1132_v4 = vpop.f32.mrb[5].mxu0 }
 0x512   : > { %v876_v5 = vpop.f32.mrb[6].mxu0 }
 0x513   : > { %v894_v6 = vadd.f32 %v1090_v1, %v886_v3  ;;  %v887_v7 = vmul.f32 %v1089_v0, %v876_v5  ;;  %v1133_v8 = vpop.f32.mrb[7].mxu0 }
 0x515   : > { %v896_v9 = vmax.f32 %v894_v6, 0.0  ;;  %v895_v10 = vadd.f32 %v1090_v1, %v887_v7 }
 0x517   : > { %898 = vxpose.xlu0.b32.start [1/2] (short) (narrow) %v896_v9, 16  ;;  %v897_v11 = vmax.f32 %v895_v10, 0.0 }
 0x51b   : > { %899 = vxpose.xlu0.b32.end [2/2] (short) (narrow) %v897_v11, 16 }
 0x597   : > { %v914_v12 = vpop.trf.xlu0 }
 0x598   : > { %931 = vst.msk [vmem:[%s456_s28] sm:$0xff] %vm930_vm14, %v914_v12 }
 0x59b   : > { %v915_v13 = vpop.trf.xlu0 }
 0x59c   : > { %932 = vst.msk [vmem:[%s456_s28 + $0x8] sm:$0xff] %vm930_vm14, %v915_v13 }
 0x59d   : > { %1236 = shalt.err (!%p1233_p5)
}
 0x59e   : > { %s1237_s26 = scalar_lea.hbm %s1533_s16, 256  ;;  %s1241_s15 = scalar_lea.hbm %s1592_s11, 512 }
 0x59f   : > { %p1238_p6 = scmp.ne.s32.totalorder %s1533_s16, %s1237_s26  ;;  %p1242_p10 = scmp.lt.u32.totalorder %s1533_s16, %s1592_s11 }
 0x5a0   : > { %p1243_p11 = scmp.lt.u32.totalorder %s1241_s15, %s1237_s26  ;;  %p1245_p13 = scmp.lt.u32.totalorder %s1237_s26, %s1533_s16 }
 0x5a1   : > { %p1239_p7 = pnand %p1238_p6, %p1411_p4 }
 0x5a2   : > { %p1244_p12 = por %p1243_p11, %p1242_p10 }
 0x5a3   : > { %p1240_p9 = pneg %p1239_p7 }
 0x5a4   : > { %p1246_p0 = por %p1245_p13, %p1244_p12 }
 0x5a6   : > { %p1247_p1 = pnand %p1246_p0, %p1240_p9 }
 0x5a8   : > { %1250 = shalt.err (!%p1247_p1)
}
 0x5a9   : > { %s1309_s0 = smov 128   ;;  %s1310_s1 = smov 8  }
 0x5aa   : > { %1138 = dma.vmem_to_hbm [thread:$0]  (%p1411_p4), %s1528_s13, 256, %s1533_s16, %s1535_s24, %s1309_s0, %s1309_s0, %s1310_s1  }
 0x5ab PF: > { %p1144_p2 = scmp.ge.s32.totalorder %s1301_s22, 2  ;;  %s963_s23 = sand.u32 1, %s1281_s17  }
 0x5ac   : > { %s964_s26 = scalar_lea.sflag [#allocation3], %s963_s23 }
 0x5ad   : > { %p1141_p3 = pnand %p1144_p2, %p1418_p8 }
 0x5af   : > { %1276 = dma.done.wait (!%p1141_p3), %s964_s26, 256  }
 0x5b0   : > { %1278 = vsyncadd (!%p1141_p3), %s964_s26, 4294967040  ;;  %s24_s22 = sadd.s32 1, %s1301_s22   ;;  %s1607_s17 = smov %s1285_s18 }
 0x5b1   : > { %p21_p5 = scmp.ge.s32.totalorder %s24_s22, 4   ;;  %s1608_s18 = smov %s1289_s19 }
 0x5b2   : > { %s1609_s19 = smov %s1424_s30  ;;  %s1610_s20 = smov %s1297_s21 }
 0x5b3   : > { %s1611_s21 = smov %s1613_s25  ;;  %23 = sbr.rel (!%p21_p5) target bundleno = 7 (0x7), region = 108 }
 0x5ba   :  { %969 = vsyncpa [#allocation3], 1 }
 0x5bb   :  { %971 = vsyncpa [#allocation3 + $0x1], 1 }

</bundles_post_ra>
